<compile_context>
chip_gen: v6e
topology: v6e:2x2x1
jax: 0.10.0
libtpu: 0.0.40
codegen_flags: <defaults>
</compile_context>

<pallas_src>
import math
from collections import namedtuple

import jax
import jax.numpy as jnp
from jax import lax
from jax.experimental import pallas as pl
from jax.experimental.pallas import tpu as pltpu

Rays = namedtuple("Rays", ["origins", "directions", "viewdirs", "radii", "near", "far"])


def _cdiv(a, b):
    return -(-a // b)


# ----------------------------------------------------------------------------
# Parameter packing.
#   packed_w : bf16 [R, Cmax]  — transposed weights (W^T), each slab starting
#              at a row offset that is a multiple of 16 (bf16 sublane packing).
#   packed_b : f32  [R, 1]     — biases at the same row offsets.
# Concat layers are split into two slabs so the kernel can replace the
# concatenations with accumulating dots.
#
# Slab order (hard-coded indices used inside the kernel):
#   0..3  density_net0            4  density_net1[0] (hidden part, bias)
#   5     density_net1[0] (skip/x part)              6..8  density_net1[1..3]
#   9     final_density           10 rgb_net0
#   11    rgb_net1[0] (hidden part, bias)            12    rgb_net1[0] (viewdir part)
#   13    final_rgb
# ----------------------------------------------------------------------------
def pack_params(params_flat, hidden):
    ws = params_flat[0::2]
    bs = params_flat[1::2]
    H = hidden
    slabs = []

    def add(wT, b):
        fo, fi = wT.shape
        bcol = (b.reshape(fo, 1).astype(jnp.float32) if b is not None
                else jnp.zeros((fo, 1), jnp.float32))
        slabs.append((wT.astype(jnp.float32), bcol, fi, fo))

    for i in range(4):                      # density_net0
        add(ws[i].T, bs[i])
    add(ws[4][:H, :].T, bs[4])              # density_net1[0], hidden input part
    add(ws[4][H:, :].T, None)               # density_net1[0], samples_enc (skip) part
    for i in range(5, 8):                   # density_net1[1..3]
        add(ws[i].T, bs[i])
    add(ws[8].T, bs[8])                     # final_density
    add(ws[9].T, bs[9])                     # rgb_net0
    add(ws[10][:H, :].T, bs[10])            # rgb_net1[0], hidden input part
    add(ws[10][H:, :].T, None)              # rgb_net1[0], viewdir part
    add(ws[11].T, bs[11])                   # final_rgb

    cmax = max(fi for _, _, fi, _ in slabs)
    layout, wblocks, bblocks, rows = [], [], [], 0
    for w, b, fi, fo in slabs:
        layout.append((rows, fi, fo))
        fo_pad = _cdiv(fo, 16) * 16                     # 16-sublane alignment (bf16)
        wblocks.append(jnp.pad(w, ((0, fo_pad - fo), (0, cmax - fi))))
        bblocks.append(jnp.pad(b, ((0, fo_pad - fo), (0, 0))))
        rows += fo_pad
    packed_w = jnp.concatenate(wblocks, axis=0).astype(jnp.bfloat16)
    packed_b = jnp.concatenate(bblocks, axis=0)
    return packed_w, packed_b, tuple(layout)


# ----------------------------------------------------------------------------
# Pallas MLP kernel (feature-major: activations are [features, T])
# ----------------------------------------------------------------------------
def make_mlp_kernel(layout, num_samples, tile_rays, tile_n, density_bias, rgb_padding):
    bf16 = jnp.bfloat16
    S = num_samples

    def kernel(x_ref, v_ref, w_ref, b_ref, dens_ref, rgb_ref):
        # x_ref: [Din, T]        IPE-encoded samples, T on the lane axis (f32)
        # v_ref: [tile_rays, Dv] per-ray viewdir encoding (row-major, f32)
        # w_ref: packed bf16 weights (see pack_params); b_ref: packed f32 biases
        def wslab(i):
            off, fi, fo = layout[i]
            return w_ref[off:off + fo, 0:fi]            # [fo, fi]  (W^T, bf16)

        def bias(i):
            off, _fi, fo = layout[i]
            return b_ref[off:off + fo, :]               # [fo, 1]   (f32)

        def lin(i, hb):
            # bf16 MXU dot, f32 accumulation; bias / epilogue stay f32.
            return jnp.dot(wslab(i), hb, preferred_element_type=jnp.float32) + bias(i)

        xb = x_ref[...].astype(bf16)                    # [Din, T]  cast once

        # density_net0: 4 x (Linear + ReLU)
        h = jnp.maximum(lin(0, xb), 0.0).astype(bf16)
        h = jnp.maximum(lin(1, h), 0.0).astype(bf16)
        h = jnp.maximum(lin(2, h), 0.0).astype(bf16)
        h = jnp.maximum(lin(3, h), 0.0).astype(bf16)

        # density_net1[0]: cat([h, x]) @ W  ->  two accumulating dots (no concat)
        pre = (jnp.dot(wslab(4), h, preferred_element_type=jnp.float32)
               + jnp.dot(wslab(5), xb, preferred_element_type=jnp.float32)
               + bias(4))
        h = jnp.maximum(pre, 0.0).astype(bf16)
        h = jnp.maximum(lin(6, h), 0.0).astype(bf16)
        h = jnp.maximum(lin(7, h), 0.0).astype(bf16)
        enc1 = jnp.maximum(lin(8, h), 0.0).astype(bf16)   # [H, T]

        # final_density -> fused softplus(raw_density + density_bias)
        t = lin(9, enc1) + density_bias                  # [1, T]
        dens_ref[...] = jnp.maximum(t, 0.0) + jnp.log(1.0 + jnp.exp(-jnp.abs(t)))

        # rgb_net0 (Linear, no activation)
        r = lin(10, enc1).astype(bf16)                   # [H, T]

        # rgb_net1[0]: cat([r, viewdirs]) @ W  ->  per-sample dot + per-ray dot.
        # The viewdir term is identical for every sample of a ray, so it is
        # computed once per ray and broadcast to samples via an exact 0/1
        # selector matmul (MXU slot, no lane relayout).
        r_pre = jnp.dot(wslab(11), r, preferred_element_type=jnp.float32)       # [S, T]
        vc = jnp.dot(wslab(12), v_ref[...].astype(bf16).T,
                     preferred_element_type=jnp.float32) + bias(11)             # [S, tile_rays]
        r_idx = lax.broadcasted_iota(jnp.int32, (tile_rays, tile_n), 0)
        c_idx = lax.broadcasted_iota(jnp.int32, (tile_rays, tile_n), 1)
        sel = jnp.where((c_idx >= r_idx * S) & (c_idx < (r_idx + 1) * S), 1.0, 0.0)
        r2 = jnp.maximum(r_pre + jnp.dot(vc, sel, preferred_element_type=jnp.float32),
                         0.0).astype(bf16)

        # final_rgb: sigmoid (stable tanh form) + rgb padding, fused epilogue.
        z = lin(13, r2)                                  # [3, T]
        sg = 0.5 * (jnp.tanh(0.5 * z) + 1.0)
        rgb_ref[...] = sg * (1.0 + 2.0 * rgb_padding) - rgb_padding

    return kernel


def mipnerf_mlp(packed_w, packed_b, layout, x_flat, vdirs_ray, *, num_samples,
                density_bias, rgb_padding, target_tile=512):
    """Run the MipNeRF MLP on flat samples; returns (density [B,S,1], rgb [B,S,3])."""
    N, Din = x_flat.shape
    B, Dv = vdirs_ray.shape
    S = num_samples
    assert N == B * S

    # Tile geometry: each grid step covers whole rays.  tile_rays % 8 == 0 keeps
    # the per-ray viewdir block sublane-legal; tile_n = tile_rays * S is a
    # multiple of 128 so every activation/output block is lane-dense.
    req = math.lcm(8, 128 // math.gcd(S, 128))
    tile_rays = max(req, (target_tile // S // req) * req)
    tile_rays = min(tile_rays, _cdiv(B, req) * req)       # don't over-pad tiny inputs
    tile_n = tile_rays * S

    n_blocks = _cdiv(B, tile_rays)
    if n_blocks > 1 and n_blocks % 2 == 1:
        n_blocks += 1                                      # even grid for 2-TC chips (v7x)
    B_pad = n_blocks * tile_rays
    N_pad = B_pad * S

    x_t = jnp.pad(x_flat, ((0, N_pad - N), (0, 0))).T      # [Din, N_pad] feature-major
    v_pad = jnp.pad(vdirs_ray, ((0, B_pad - B), (0, 0)))   # [B_pad, Dv]  per-ray

    kernel = make_mlp_kernel(layout, S, tile_rays, tile_n,
                             float(density_bias), float(rgb_padding))

    dens_t, rgb_t = pl.pallas_call(
        kernel,
        out_shape=(jax.ShapeDtypeStruct((1, N_pad), jnp.float32),
                   jax.ShapeDtypeStruct((3, N_pad), jnp.float32)),
        grid_spec=pltpu.PrefetchScalarGridSpec(
            num_scalar_prefetch=0,
            grid=(n_blocks,),
            in_specs=[
                pl.BlockSpec((Din, tile_n), lambda i: (0, i)),       # samples (lane-dense)
                pl.BlockSpec((tile_rays, Dv), lambda i: (i, 0)),     # per-ray viewdirs
                pl.BlockSpec(packed_w.shape, lambda i: (0, 0)),      # grid-invariant weights
                pl.BlockSpec(packed_b.shape, lambda i: (0, 0)),      # grid-invariant biases
            ],
            out_specs=[
                pl.BlockSpec((1, tile_n), lambda i: (0, i)),
                pl.BlockSpec((3, tile_n), lambda i: (0, i)),
            ]),
        compiler_params=pltpu.CompilerParams(
            dimension_semantics=("parallel",),
            vmem_limit_bytes=48 * 1024 * 1024),
    )(x_t, v_pad, packed_w, packed_b)

    density = dens_t[0, :N].reshape(B, S, 1)
    rgb = rgb_t[:, :N].T.reshape(B, S, 3)
    return density, rgb


# ----------------------------------------------------------------------------
# Plain-JAX glue: positional encoding, ray sampling, volumetric rendering
# (mip-NeRF reference, non-randomized path)
# ----------------------------------------------------------------------------
def integrated_pos_enc(x, y, scales):
    shape = x.shape[:-1] + (-1,)
    x_enc = (x[..., None, :] * scales[:, None]).reshape(shape)
    x_enc = jnp.concatenate([x_enc, x_enc + 0.5 * jnp.pi], axis=-1)
    y_enc = (y[..., None, :] * (scales[:, None] ** 2)).reshape(shape)
    y_enc = jnp.concatenate([y_enc, y_enc], axis=-1)
    return jnp.exp(-0.5 * y_enc) * jnp.sin(x_enc)


def pos_enc(x, scales):
    shape = x.shape[:-1] + (-1,)
    x_enc = (x[..., None, :] * scales[:, None]).reshape(shape)
    x_enc = jnp.concatenate([x_enc, x_enc + 0.5 * jnp.pi], axis=-1)
    return jnp.sin(x_enc)


def _lift_gaussian(d, t_mean, t_var, r_var):
    mean = d[..., None, :] * t_mean[..., None]
    d_mag_sq = jnp.maximum(1e-10, jnp.sum(d ** 2, axis=-1, keepdims=True))
    d_outer_diag = d ** 2
    null_outer_diag = 1.0 - d_outer_diag / d_mag_sq
    t_cov_diag = t_var[..., None] * d_outer_diag[..., None, :]
    xy_cov_diag = r_var[..., None] * null_outer_diag[..., None, :]
    return mean, t_cov_diag + xy_cov_diag


def _conical_frustum_to_gaussian(d, t0, t1, base_radius):
    mu = (t0 + t1) / 2.0
    hw = (t1 - t0) / 2.0
    denom = 3.0 * mu ** 2 + hw ** 2
    t_mean = mu + (2.0 * mu * hw ** 2) / denom
    t_var = (hw ** 2) / 3.0 - (4.0 / 15.0) * ((hw ** 4 * (12.0 * mu ** 2 - hw ** 2)) / denom ** 2)
    r_var = base_radius ** 2 * ((mu ** 2) / 4.0 + (5.0 / 12.0) * hw ** 2
                                - (4.0 / 15.0) * (hw ** 4) / denom)
    return _lift_gaussian(d, t_mean, t_var, r_var)


def _cast_rays(t_vals, origins, directions, radii):
    t0, t1 = t_vals[..., :-1], t_vals[..., 1:]
    means, covs = _conical_frustum_to_gaussian(directions, t0, t1, radii)
    means = means + origins[..., None, :]
    return means, covs


def sample_along_rays(origins, directions, radii, num_samples, near, far):
    batch = origins.shape[0]
    t = jnp.linspace(0.0, 1.0, num_samples + 1, dtype=jnp.float32)
    t_vals = near * (1.0 - t) + far * t
    t_vals = jnp.broadcast_to(t_vals, (batch, num_samples + 1))
    means, covs = _cast_rays(t_vals, origins, directions, radii)
    return t_vals, (means, covs)


def _sorted_piecewise_constant_pdf(bins, weights, num_samples):
    eps = 1e-5
    weight_sum = jnp.sum(weights, axis=-1, keepdims=True)
    padding = jnp.maximum(0.0, eps - weight_sum)
    weights = weights + padding / weights.shape[-1]
    weight_sum = weight_sum + padding

    pdf = weights / weight_sum
    cdf = jnp.minimum(1.0, jnp.cumsum(pdf[..., :-1], axis=-1))
    cdf = jnp.concatenate(
        [jnp.zeros(cdf.shape[:-1] + (1,), cdf.dtype), cdf,
         jnp.ones(cdf.shape[:-1] + (1,), cdf.dtype)], axis=-1)

    u = jnp.linspace(0.0, 1.0 - eps, num_samples, dtype=jnp.float32)
    u = jnp.broadcast_to(u, cdf.shape[:-1] + (num_samples,))

    mask = u[..., None, :] >= cdf[..., :, None]

    def find_interval(x):
        x0 = jnp.max(jnp.where(mask, x[..., None], x[..., :1, None]), axis=-2)
        x1 = jnp.min(jnp.where(~mask, x[..., None], x[..., -1:, None]), axis=-2)
        return x0, x1

    bins_g0, bins_g1 = find_interval(bins)
    cdf_g0, cdf_g1 = find_interval(cdf)

    t = jnp.clip(jnp.nan_to_num((u - cdf_g0) / (cdf_g1 - cdf_g0), nan=0.0), 0.0, 1.0)
    return bins_g0 + t * (bins_g1 - bins_g0)


def resample_along_rays(origins, directions, radii, t_vals, weights, resample_padding):
    weights = jax.lax.stop_gradient(weights)
    weights_pad = jnp.concatenate([weights[..., :1], weights, weights[..., -1:]], axis=-1)
    weights_max = jnp.maximum(weights_pad[..., :-1], weights_pad[..., 1:])
    weights_blur = 0.5 * (weights_max[..., :-1] + weights_max[..., 1:])
    weights = weights_blur + resample_padding
    new_t_vals = _sorted_piecewise_constant_pdf(t_vals, weights, t_vals.shape[-1])
    means, covs = _cast_rays(new_t_vals, origins, directions, radii)
    return new_t_vals, (means, covs)


def volumetric_rendering(rgb, density, t_vals, dirs, white_bkgd):
    t_mids = 0.5 * (t_vals[..., :-1] + t_vals[..., 1:])
    t_dists = t_vals[..., 1:] - t_vals[..., :-1]
    delta = t_dists * jnp.linalg.norm(dirs[..., None, :], axis=-1)
    density_delta = density[..., 0] * delta
    alpha = 1.0 - jnp.exp(-density_delta)
    trans = jnp.exp(-jnp.concatenate(
        [jnp.zeros_like(density_delta[..., :1]),
         jnp.cumsum(density_delta[..., :-1], axis=-1)], axis=-1))
    weights = alpha * trans

    comp_rgb = (weights[..., None] * rgb).sum(axis=-2)
    acc = weights.sum(axis=-1)
    distance = (weights * t_mids).sum(axis=-1) / acc
    distance = jnp.clip(jnp.nan_to_num(distance, nan=jnp.finfo(jnp.float32).max),
                        t_vals[:, 0], t_vals[:, -1])
    if white_bkgd:
        comp_rgb = comp_rgb + (1.0 - acc[..., None])
    return comp_rgb, distance, acc, weights, alpha


# ----------------------------------------------------------------------------
# Parameter init (deterministic, Xavier-uniform like _xavier_init)
# ----------------------------------------------------------------------------
def _linear_params(key, fan_in, fan_out):
    kw, kb = jax.random.split(key)
    limit = math.sqrt(6.0 / (fan_in + fan_out))
    w = jax.random.uniform(kw, (fan_in, fan_out), jnp.float32, -limit, limit)
    bound = 1.0 / math.sqrt(fan_in)
    b = jax.random.uniform(kb, (1, fan_out), jnp.float32, -bound, bound)
    return w, b


def init_mipnerf_params(key, density_input, hidden, rgb_input, num_samples):
    sizes = (
        [(density_input, hidden)] + [(hidden, hidden)] * 3            # density_net0
        + [(density_input + hidden, hidden)] + [(hidden, hidden)] * 3  # density_net1
        + [(hidden, 1)]                                                # final_density
        + [(hidden, hidden)]                                           # rgb_net0
        + [(hidden + rgb_input, num_samples)]                          # rgb_net1
        + [(num_samples, 3)]                                           # final_rgb
    )
    keys = jax.random.split(key, len(sizes))
    flat = []
    for k, (fi, fo) in zip(keys, sizes):
        w, b = _linear_params(k, fi, fo)
        flat += [w, b]
    # NOTE: offset head (w1/b1 == zeros) is unused in the Flag=True path.
    return flat


# ----------------------------------------------------------------------------
# MipNeRF forward (Flag=True, randomized=False, return_raw=False)
# ----------------------------------------------------------------------------
def mipnerf_forward(packed_w, packed_b, layout, rays, *, num_levels, num_samples,
                    min_deg, max_deg, vmin_deg, vmax_deg,
                    rgb_padding, resample_padding, density_bias,
                    white_bkgd, target_tile=512):
    scales = jnp.array([2.0 ** i for i in range(min_deg, max_deg)], jnp.float32)
    vscales = jnp.array([2.0 ** i for i in range(vmin_deg, vmax_deg)], jnp.float32)

    # Per-ray viewdir encoding (no per-sample tiling; broadcast happens in-kernel).
    vdirs = jnp.concatenate([pos_enc(rays.viewdirs, vscales), rays.viewdirs], axis=-1)

    comp_rgbs, distances, accs = [], [], []
    t_vals, weights = None, None

    for level in range(num_levels):
        if level == 0:
            t_vals, (mean, var) = sample_along_rays(
                rays.origins, rays.directions, rays.radii,
                num_samples, rays.near, rays.far)
        else:
            t_vals, (mean, var) = resample_along_rays(
                rays.origins, rays.directions, rays.radii,
                t_vals, weights, resample_padding)

        samples_enc = integrated_pos_enc(mean, var, scales)        # [B, S, Din]
        samples_enc = samples_enc.reshape(-1, samples_enc.shape[-1])

        density, rgb = mipnerf_mlp(
            packed_w, packed_b, layout, samples_enc, vdirs,
            num_samples=num_samples, density_bias=density_bias,
            rgb_padding=rgb_padding, target_tile=target_tile)

        comp_rgb, distance, acc, weights, _alpha = volumetric_rendering(
            rgb, density, t_vals, rays.directions, white_bkgd)

        comp_rgbs.append(comp_rgb)
        distances.append(distance)
        accs.append(acc)

    return jnp.stack(comp_rgbs), jnp.stack(distances), jnp.stack(accs)


# ----------------------------------------------------------------------------
# Demo
# ----------------------------------------------------------------------------
if __name__ == "__main__":
    B = 8              # rays per chunk
    num_samples = 8
    hidden = 32
    min_deg, max_deg = 0, 4
    vmin_deg, vmax_deg = 0, 2
    density_input = (max_deg - min_deg) * 3 * 2        # 24
    rgb_input = 3 + (vmax_deg - vmin_deg) * 3 * 2      # 15

    key = jax.random.PRNGKey(0)
    kp, ko, kd = jax.random.split(key, 3)

    params_flat = init_mipnerf_params(kp, density_input, hidden, rgb_input, num_samples)
    packed_w, packed_b, layout = pack_params(params_flat, hidden)

    origins = jax.random.normal(ko, (B, 3), jnp.float32)
    directions = jax.random.normal(kd, (B, 3), jnp.float32)
    viewdirs = directions / jnp.linalg.norm(directions, axis=-1, keepdims=True)
    radii = jnp.full((B, 1), 0.01, jnp.float32)
    near = jnp.full((B, 1), 2.0, jnp.float32)
    far = jnp.full((B, 1), 6.0, jnp.float32)
    rays = Rays(origins, directions, viewdirs, radii, near, far)

    comp_rgbs, dists, accs = mipnerf_forward(
        packed_w, packed_b, layout, rays,
        num_levels=2, num_samples=num_samples,
        min_deg=min_deg, max_deg=max_deg,
        vmin_deg=vmin_deg, vmax_deg=vmax_deg,
        rgb_padding=0.001, resample_padding=0.01,
        density_bias=-1.0, white_bkgd=True, target_tile=512)
    jax.block_until_ready((comp_rgbs, dists, accs))

    assert comp_rgbs.shape == (2, B, 3)
    assert dists.shape == (2, B)
    assert accs.shape == (2, B)
    assert bool(jnp.all(jnp.isfinite(comp_rgbs)))
    print("KERNEL_OK")
</pallas_src>

<mosaic_0001>
module attributes {stable_mosaic.version = 11 : i64} {
  func.func @kernel(%arg0: i32, %arg1: memref<24x128xf32, #tpu.memory_space<vmem>>, %arg2: memref<16x15xf32, #tpu.memory_space<vmem>>, %arg3: memref<384x32xbf16, #tpu.memory_space<vmem>>, %arg4: memref<384x1xf32, #tpu.memory_space<vmem>>, %arg5: memref<1x128xf32, #tpu.memory_space<vmem>>, %arg6: memref<3x128xf32, #tpu.memory_space<vmem>>) attributes {dimension_semantics = [#tpu.dimension_semantics<parallel>], iteration_bounds = array<i64: 1>, scalar_prefetch = 0 : i64, scratch_operands = 0 : i64, tpu.core_type = #tpu.core_type<tc>, window_params = [{transform_indices = @transform_0, window_bounds = array<i64: 24, 128>}, {transform_indices = @transform_1, window_bounds = array<i64: 16, 15>}, {pipeline_mode = #tpu.pipeline_mode<synchronous>, transform_indices = @transform_2, window_bounds = array<i64: 384, 32>}, {pipeline_mode = #tpu.pipeline_mode<synchronous>, transform_indices = @transform_3, window_bounds = array<i64: 384, 1>}, {transform_indices = @transform_4, window_bounds = array<i64: 1, 128>}, {transform_indices = @transform_5, window_bounds = array<i64: 3, 128>}]} {
    %c0 = arith.constant 0 : index
    %c0_0 = arith.constant 0 : index
    %0 = vector.load %arg1[%c0, %c0_0] : memref<24x128xf32, #tpu.memory_space<vmem>>, vector<24x128xf32>
    %1 = arith.truncf %0 : vector<24x128xf32> to vector<24x128xbf16>
    %c0_1 = arith.constant 0 : index
    %c0_2 = arith.constant 0 : index
    %2 = vector.load %arg3[%c0_1, %c0_2] : memref<384x32xbf16, #tpu.memory_space<vmem>>, vector<32x24xbf16>
    %cst = arith.constant dense<0.000000e+00> : vector<32x128xf32>
    %3 = tpu.matmul %2, %1, %cst {dimension_numbers = #tpu.dot_dimension_numbers<[1], [0], [0], [1], [0, 0, 1, 1], [], []>} : vector<32x24xbf16>, vector<24x128xbf16>, vector<32x128xf32> -> vector<32x128xf32>
    %c0_3 = arith.constant 0 : index
    %c0_4 = arith.constant 0 : index
    %4 = vector.load %arg4[%c0_3, %c0_4] : memref<384x1xf32, #tpu.memory_space<vmem>>, vector<32x1xf32>
    %5 = vector.broadcast %4 : vector<32x1xf32> to vector<32x128xf32>
    %6 = arith.addf %3, %5 : vector<32x128xf32>
    %cst_5 = arith.constant 0.000000e+00 : f32
    %7 = vector.broadcast %cst_5 : f32 to vector<32x128xf32>
    %8 = arith.maximumf %6, %7 : vector<32x128xf32>
    %9 = arith.truncf %8 : vector<32x128xf32> to vector<32x128xbf16>
    %c32 = arith.constant 32 : index
    %c0_6 = arith.constant 0 : index
    %10 = vector.load %arg3[%c32, %c0_6] : memref<384x32xbf16, #tpu.memory_space<vmem>>, vector<32x32xbf16>
    %cst_7 = arith.constant dense<0.000000e+00> : vector<32x128xf32>
    %11 = tpu.matmul %10, %9, %cst_7 {dimension_numbers = #tpu.dot_dimension_numbers<[1], [0], [0], [1], [0, 0, 1, 1], [], []>} : vector<32x32xbf16>, vector<32x128xbf16>, vector<32x128xf32> -> vector<32x128xf32>
    %c32_8 = arith.constant 32 : index
    %c0_9 = arith.constant 0 : index
    %12 = vector.load %arg4[%c32_8, %c0_9] : memref<384x1xf32, #tpu.memory_space<vmem>>, vector<32x1xf32>
    %13 = vector.broadcast %12 : vector<32x1xf32> to vector<32x128xf32>
    %14 = arith.addf %11, %13 : vector<32x128xf32>
    %cst_10 = arith.constant 0.000000e+00 : f32
    %15 = vector.broadcast %cst_10 : f32 to vector<32x128xf32>
    %16 = arith.maximumf %14, %15 : vector<32x128xf32>
    %17 = arith.truncf %16 : vector<32x128xf32> to vector<32x128xbf16>
    %c64 = arith.constant 64 : index
    %c0_11 = arith.constant 0 : index
    %18 = vector.load %arg3[%c64, %c0_11] : memref<384x32xbf16, #tpu.memory_space<vmem>>, vector<32x32xbf16>
    %cst_12 = arith.constant dense<0.000000e+00> : vector<32x128xf32>
    %19 = tpu.matmul %18, %17, %cst_12 {dimension_numbers = #tpu.dot_dimension_numbers<[1], [0], [0], [1], [0, 0, 1, 1], [], []>} : vector<32x32xbf16>, vector<32x128xbf16>, vector<32x128xf32> -> vector<32x128xf32>
    %c64_13 = arith.constant 64 : index
    %c0_14 = arith.constant 0 : index
    %20 = vector.load %arg4[%c64_13, %c0_14] : memref<384x1xf32, #tpu.memory_space<vmem>>, vector<32x1xf32>
    %21 = vector.broadcast %20 : vector<32x1xf32> to vector<32x128xf32>
    %22 = arith.addf %19, %21 : vector<32x128xf32>
    %cst_15 = arith.constant 0.000000e+00 : f32
    %23 = vector.broadcast %cst_15 : f32 to vector<32x128xf32>
    %24 = arith.maximumf %22, %23 : vector<32x128xf32>
    %25 = arith.truncf %24 : vector<32x128xf32> to vector<32x128xbf16>
    %c96 = arith.constant 96 : index
    %c0_16 = arith.constant 0 : index
    %26 = vector.load %arg3[%c96, %c0_16] : memref<384x32xbf16, #tpu.memory_space<vmem>>, vector<32x32xbf16>
    %cst_17 = arith.constant dense<0.000000e+00> : vector<32x128xf32>
    %27 = tpu.matmul %26, %25, %cst_17 {dimension_numbers = #tpu.dot_dimension_numbers<[1], [0], [0], [1], [0, 0, 1, 1], [], []>} : vector<32x32xbf16>, vector<32x128xbf16>, vector<32x128xf32> -> vector<32x128xf32>
    %c96_18 = arith.constant 96 : index
    %c0_19 = arith.constant 0 : index
    %28 = vector.load %arg4[%c96_18, %c0_19] : memref<384x1xf32, #tpu.memory_space<vmem>>, vector<32x1xf32>
    %29 = vector.broadcast %28 : vector<32x1xf32> to vector<32x128xf32>
    %30 = arith.addf %27, %29 : vector<32x128xf32>
    %cst_20 = arith.constant 0.000000e+00 : f32
    %31 = vector.broadcast %cst_20 : f32 to vector<32x128xf32>
    %32 = arith.maximumf %30, %31 : vector<32x128xf32>
    %33 = arith.truncf %32 : vector<32x128xf32> to vector<32x128xbf16>
    %c128 = arith.constant 128 : index
    %c0_21 = arith.constant 0 : index
    %34 = vector.load %arg3[%c128, %c0_21] : memref<384x32xbf16, #tpu.memory_space<vmem>>, vector<32x32xbf16>
    %cst_22 = arith.constant dense<0.000000e+00> : vector<32x128xf32>
    %35 = tpu.matmul %34, %33, %cst_22 {dimension_numbers = #tpu.dot_dimension_numbers<[1], [0], [0], [1], [0, 0, 1, 1], [], []>} : vector<32x32xbf16>, vector<32x128xbf16>, vector<32x128xf32> -> vector<32x128xf32>
    %c160 = arith.constant 160 : index
    %c0_23 = arith.constant 0 : index
    %36 = vector.load %arg3[%c160, %c0_23] : memref<384x32xbf16, #tpu.memory_space<vmem>>, vector<32x24xbf16>
    %cst_24 = arith.constant dense<0.000000e+00> : vector<32x128xf32>
    %37 = tpu.matmul %36, %1, %cst_24 {dimension_numbers = #tpu.dot_dimension_numbers<[1], [0], [0], [1], [0, 0, 1, 1], [], []>} : vector<32x24xbf16>, vector<24x128xbf16>, vector<32x128xf32> -> vector<32x128xf32>
    %38 = arith.addf %35, %37 : vector<32x128xf32>
    %c128_25 = arith.constant 128 : index
    %c0_26 = arith.constant 0 : index
    %39 = vector.load %arg4[%c128_25, %c0_26] : memref<384x1xf32, #tpu.memory_space<vmem>>, vector<32x1xf32>
    %40 = vector.broadcast %39 : vector<32x1xf32> to vector<32x128xf32>
    %41 = arith.addf %38, %40 : vector<32x128xf32>
    %cst_27 = arith.constant 0.000000e+00 : f32
    %42 = vector.broadcast %cst_27 : f32 to vector<32x128xf32>
    %43 = arith.maximumf %41, %42 : vector<32x128xf32>
    %44 = arith.truncf %43 : vector<32x128xf32> to vector<32x128xbf16>
    %c192 = arith.constant 192 : index
    %c0_28 = arith.constant 0 : index
    %45 = vector.load %arg3[%c192, %c0_28] : memref<384x32xbf16, #tpu.memory_space<vmem>>, vector<32x32xbf16>
    %cst_29 = arith.constant dense<0.000000e+00> : vector<32x128xf32>
    %46 = tpu.matmul %45, %44, %cst_29 {dimension_numbers = #tpu.dot_dimension_numbers<[1], [0], [0], [1], [0, 0, 1, 1], [], []>} : vector<32x32xbf16>, vector<32x128xbf16>, vector<32x128xf32> -> vector<32x128xf32>
    %c192_30 = arith.constant 192 : index
    %c0_31 = arith.constant 0 : index
    %47 = vector.load %arg4[%c192_30, %c0_31] : memref<384x1xf32, #tpu.memory_space<vmem>>, vector<32x1xf32>
    %48 = vector.broadcast %47 : vector<32x1xf32> to vector<32x128xf32>
    %49 = arith.addf %46, %48 : vector<32x128xf32>
    %cst_32 = arith.constant 0.000000e+00 : f32
    %50 = vector.broadcast %cst_32 : f32 to vector<32x128xf32>
    %51 = arith.maximumf %49, %50 : vector<32x128xf32>
    %52 = arith.truncf %51 : vector<32x128xf32> to vector<32x128xbf16>
    %c224 = arith.constant 224 : index
    %c0_33 = arith.constant 0 : index
    %53 = vector.load %arg3[%c224, %c0_33] : memref<384x32xbf16, #tpu.memory_space<vmem>>, vector<32x32xbf16>
    %cst_34 = arith.constant dense<0.000000e+00> : vector<32x128xf32>
    %54 = tpu.matmul %53, %52, %cst_34 {dimension_numbers = #tpu.dot_dimension_numbers<[1], [0], [0], [1], [0, 0, 1, 1], [], []>} : vector<32x32xbf16>, vector<32x128xbf16>, vector<32x128xf32> -> vector<32x128xf32>
    %c224_35 = arith.constant 224 : index
    %c0_36 = arith.constant 0 : index
    %55 = vector.load %arg4[%c224_35, %c0_36] : memref<384x1xf32, #tpu.memory_space<vmem>>, vector<32x1xf32>
    %56 = vector.broadcast %55 : vector<32x1xf32> to vector<32x128xf32>
    %57 = arith.addf %54, %56 : vector<32x128xf32>
    %cst_37 = arith.constant 0.000000e+00 : f32
    %58 = vector.broadcast %cst_37 : f32 to vector<32x128xf32>
    %59 = arith.maximumf %57, %58 : vector<32x128xf32>
    %60 = arith.truncf %59 : vector<32x128xf32> to vector<32x128xbf16>
    %c256 = arith.constant 256 : index
    %c0_38 = arith.constant 0 : index
    %61 = vector.load %arg3[%c256, %c0_38] : memref<384x32xbf16, #tpu.memory_space<vmem>>, vector<32x32xbf16>
    %cst_39 = arith.constant dense<0.000000e+00> : vector<32x128xf32>
    %62 = tpu.matmul %61, %60, %cst_39 {dimension_numbers = #tpu.dot_dimension_numbers<[1], [0], [0], [1], [0, 0, 1, 1], [], []>} : vector<32x32xbf16>, vector<32x128xbf16>, vector<32x128xf32> -> vector<32x128xf32>
    %c256_40 = arith.constant 256 : index
    %c0_41 = arith.constant 0 : index
    %63 = vector.load %arg4[%c256_40, %c0_41] : memref<384x1xf32, #tpu.memory_space<vmem>>, vector<32x1xf32>
    %64 = vector.broadcast %63 : vector<32x1xf32> to vector<32x128xf32>
    %65 = arith.addf %62, %64 : vector<32x128xf32>
    %cst_42 = arith.constant 0.000000e+00 : f32
    %66 = vector.broadcast %cst_42 : f32 to vector<32x128xf32>
    %67 = arith.maximumf %65, %66 : vector<32x128xf32>
    %68 = arith.truncf %67 : vector<32x128xf32> to vector<32x128xbf16>
    %c288 = arith.constant 288 : index
    %c0_43 = arith.constant 0 : index
    %69 = vector.load %arg3[%c288, %c0_43] : memref<384x32xbf16, #tpu.memory_space<vmem>>, vector<1x32xbf16>
    %cst_44 = arith.constant dense<0.000000e+00> : vector<1x128xf32>
    %70 = tpu.matmul %69, %68, %cst_44 {dimension_numbers = #tpu.dot_dimension_numbers<[1], [0], [0], [1], [0, 0, 1, 1], [], []>} : vector<1x32xbf16>, vector<32x128xbf16>, vector<1x128xf32> -> vector<1x128xf32>
    %c288_45 = arith.constant 288 : index
    %c0_46 = arith.constant 0 : index
    %71 = vector.load %arg4[%c288_45, %c0_46] : memref<384x1xf32, #tpu.memory_space<vmem>>, vector<1x1xf32>
    %72 = vector.broadcast %71 : vector<1x1xf32> to vector<1x128xf32>
    %73 = arith.addf %70, %72 : vector<1x128xf32>
    %cst_47 = arith.constant -1.000000e+00 : f32
    %74 = vector.broadcast %cst_47 : f32 to vector<1x128xf32>
    %75 = arith.addf %73, %74 : vector<1x128xf32>
    %cst_48 = arith.constant 0.000000e+00 : f32
    %76 = vector.broadcast %cst_48 : f32 to vector<1x128xf32>
    %77 = arith.maximumf %75, %76 : vector<1x128xf32>
    %78 = math.absf %75 : vector<1x128xf32>
    %cst_49 = arith.constant 0.000000e+00 : f32
    %79 = vector.broadcast %cst_49 : f32 to vector<1x128xf32>
    %80 = arith.subf %79, %78 : vector<1x128xf32>
    %81 = math.exp %80 : vector<1x128xf32>
    %cst_50 = arith.constant 1.000000e+00 : f32
    %82 = vector.broadcast %cst_50 : f32 to vector<1x128xf32>
    %83 = arith.addf %82, %81 : vector<1x128xf32>
    %84 = math.log %83 : vector<1x128xf32>
    %85 = arith.addf %77, %84 : vector<1x128xf32>
    %c0_51 = arith.constant 0 : index
    %c0_52 = arith.constant 0 : index
    %86 = vector.load %arg5[%c0_51, %c0_52] : memref<1x128xf32, #tpu.memory_space<vmem>>, vector<1x128xf32>
    tpu.vector_store %arg5[%c0_51, %c0_52], %85 {strides = array<i32>} : memref<1x128xf32, #tpu.memory_space<vmem>>, vector<1x128xf32>,
    %c304 = arith.constant 304 : index
    %c0_53 = arith.constant 0 : index
    %87 = vector.load %arg3[%c304, %c0_53] : memref<384x32xbf16, #tpu.memory_space<vmem>>, vector<32x32xbf16>
    %cst_54 = arith.constant dense<0.000000e+00> : vector<32x128xf32>
    %88 = tpu.matmul %87, %68, %cst_54 {dimension_numbers = #tpu.dot_dimension_numbers<[1], [0], [0], [1], [0, 0, 1, 1], [], []>} : vector<32x32xbf16>, vector<32x128xbf16>, vector<32x128xf32> -> vector<32x128xf32>
    %c304_55 = arith.constant 304 : index
    %c0_56 = arith.constant 0 : index
    %89 = vector.load %arg4[%c304_55, %c0_56] : memref<384x1xf32, #tpu.memory_space<vmem>>, vector<32x1xf32>
    %90 = vector.broadcast %89 : vector<32x1xf32> to vector<32x128xf32>
    %91 = arith.addf %88, %90 : vector<32x128xf32>
    %92 = arith.truncf %91 : vector<32x128xf32> to vector<32x128xbf16>
    %c336 = arith.constant 336 : index
    %c0_57 = arith.constant 0 : index
    %93 = vector.load %arg3[%c336, %c0_57] : memref<384x32xbf16, #tpu.memory_space<vmem>>, vector<8x32xbf16>
    %cst_58 = arith.constant dense<0.000000e+00> : vector<8x128xf32>
    %94 = tpu.matmul %93, %92, %cst_58 {dimension_numbers = #tpu.dot_dimension_numbers<[1], [0], [0], [1], [0, 0, 1, 1], [], []>} : vector<8x32xbf16>, vector<32x128xbf16>, vector<8x128xf32> -> vector<8x128xf32>
    %c352 = arith.constant 352 : index
    %c0_59 = arith.constant 0 : index
    %95 = vector.load %arg3[%c352, %c0_59] : memref<384x32xbf16, #tpu.memory_space<vmem>>, vector<8x15xbf16>
    %c0_60 = arith.constant 0 : index
    %c0_61 = arith.constant 0 : index
    %96 = vector.load %arg2[%c0_60, %c0_61] : memref<16x15xf32, #tpu.memory_space<vmem>>, vector<16x15xf32>
    %97 = arith.truncf %96 : vector<16x15xf32> to vector<16x15xbf16>
    %98 = tpu.transpose %97, [1, 0] : vector<16x15xbf16> -> vector<15x16xbf16>
    %cst_62 = arith.constant dense<0.000000e+00> : vector<8x16xf32>
    %99 = tpu.matmul %95, %98, %cst_62 {dimension_numbers = #tpu.dot_dimension_numbers<[1], [0], [0], [1], [0, 0, 1, 1], [], []>} : vector<8x15xbf16>, vector<15x16xbf16>, vector<8x16xf32> -> vector<8x16xf32>
    %c336_63 = arith.constant 336 : index
    %c0_64 = arith.constant 0 : index
    %100 = vector.load %arg4[%c336_63, %c0_64] : memref<384x1xf32, #tpu.memory_space<vmem>>, vector<8x1xf32>
    %101 = vector.broadcast %100 : vector<8x1xf32> to vector<8x16xf32>
    %102 = arith.addf %99, %101 : vector<8x16xf32>
    %103 = tpu.iota {dimensions = array<i32: 0>} : vector<16x128xi32>
    %104 = tpu.iota {dimensions = array<i32: 1>} : vector<16x128xi32>
    %c8_i32 = arith.constant 8 : i32
    %105 = vector.broadcast %c8_i32 : i32 to vector<16x128xi32>
    %106 = arith.muli %103, %105 : vector<16x128xi32>
    %107 = arith.cmpi sge, %104, %106 : vector<16x128xi32>
    %c1_i32 = arith.constant 1 : i32
    %108 = vector.broadcast %c1_i32 : i32 to vector<16x128xi32>
    %109 = arith.addi %103, %108 : vector<16x128xi32>
    %c8_i32_65 = arith.constant 8 : i32
    %110 = vector.broadcast %c8_i32_65 : i32 to vector<16x128xi32>
    %111 = arith.muli %109, %110 : vector<16x128xi32>
    %112 = arith.cmpi slt, %104, %111 : vector<16x128xi32>
    %113 = arith.andi %107, %112 : vector<16x128xi1>
    %cst_66 = arith.constant 1.000000e+00 : f32
    %cst_67 = arith.constant 0.000000e+00 : f32
    %114 = vector.broadcast %cst_66 : f32 to vector<16x128xf32>
    %115 = vector.broadcast %cst_67 : f32 to vector<16x128xf32>
    %116 = arith.select %113, %114, %115 : vector<16x128xi1>, vector<16x128xf32>
    %cst_68 = arith.constant dense<0.000000e+00> : vector<8x128xf32>
    %117 = tpu.matmul %102, %116, %cst_68 {dimension_numbers = #tpu.dot_dimension_numbers<[1], [0], [0], [1], [0, 0, 1, 1], [], []>} : vector<8x16xf32>, vector<16x128xf32>, vector<8x128xf32> -> vector<8x128xf32>
    %118 = arith.addf %94, %117 : vector<8x128xf32>
    %cst_69 = arith.constant 0.000000e+00 : f32
    %119 = vector.broadcast %cst_69 : f32 to vector<8x128xf32>
    %120 = arith.maximumf %118, %119 : vector<8x128xf32>
    %121 = arith.truncf %120 : vector<8x128xf32> to vector<8x128xbf16>
    %c368 = arith.constant 368 : index
    %c0_70 = arith.constant 0 : index
    %122 = vector.load %arg3[%c368, %c0_70] : memref<384x32xbf16, #tpu.memory_space<vmem>>, vector<3x8xbf16>
    %cst_71 = arith.constant dense<0.000000e+00> : vector<3x128xf32>
    %123 = tpu.matmul %122, %121, %cst_71 {dimension_numbers = #tpu.dot_dimension_numbers<[1], [0], [0], [1], [0, 0, 1, 1], [], []>} : vector<3x8xbf16>, vector<8x128xbf16>, vector<3x128xf32> -> vector<3x128xf32>
    %c368_72 = arith.constant 368 : index
    %c0_73 = arith.constant 0 : index
    %124 = vector.load %arg4[%c368_72, %c0_73] : memref<384x1xf32, #tpu.memory_space<vmem>>, vector<3x1xf32>
    %125 = vector.broadcast %124 : vector<3x1xf32> to vector<3x128xf32>
    %126 = arith.addf %123, %125 : vector<3x128xf32>
    %cst_74 = arith.constant 5.000000e-01 : f32
    %127 = vector.broadcast %cst_74 : f32 to vector<3x128xf32>
    %128 = arith.mulf %127, %126 : vector<3x128xf32>
    %129 = math.tanh %128 : vector<3x128xf32>
    %cst_75 = arith.constant 1.000000e+00 : f32
    %130 = vector.broadcast %cst_75 : f32 to vector<3x128xf32>
    %131 = arith.addf %129, %130 : vector<3x128xf32>
    %cst_76 = arith.constant 5.000000e-01 : f32
    %132 = vector.broadcast %cst_76 : f32 to vector<3x128xf32>
    %133 = arith.mulf %132, %131 : vector<3x128xf32>
    %cst_77 = arith.constant 1.002000e+00 : f32
    %134 = vector.broadcast %cst_77 : f32 to vector<3x128xf32>
    %135 = arith.mulf %133, %134 : vector<3x128xf32>
    %cst_78 = arith.constant 1.000000e-03 : f32
    %136 = vector.broadcast %cst_78 : f32 to vector<3x128xf32>
    %137 = arith.subf %135, %136 : vector<3x128xf32>
    %c0_79 = arith.constant 0 : index
    %c0_80 = arith.constant 0 : index
    %138 = vector.load %arg6[%c0_79, %c0_80] : memref<3x128xf32, #tpu.memory_space<vmem>>, vector<3x128xf32>
    tpu.vector_store %arg6[%c0_79, %c0_80], %137 {strides = array<i32>} : memref<3x128xf32, #tpu.memory_space<vmem>>, vector<3x128xf32>,
    return
  }
  func.func @transform_0(%arg0: i32) -> (i32, i32) {
    %c0_i32 = arith.constant 0 : i32
    %c0_i32_0 = arith.constant 0 : i32
    return %c0_i32, %arg0 : i32, i32
  }
  func.func @transform_1(%arg0: i32) -> (i32, i32) {
    %c0_i32 = arith.constant 0 : i32
    %c0_i32_0 = arith.constant 0 : i32
    return %arg0, %c0_i32 : i32, i32
  }
  func.func @transform_2(%arg0: i32) -> (i32, i32) {
    %c0_i32 = arith.constant 0 : i32
    %c0_i32_0 = arith.constant 0 : i32
    %c0_i32_1 = arith.constant 0 : i32
    return %c0_i32, %c0_i32_0 : i32, i32
  }
  func.func @transform_3(%arg0: i32) -> (i32, i32) {
    %c0_i32 = arith.constant 0 : i32
    %c0_i32_0 = arith.constant 0 : i32
    %c0_i32_1 = arith.constant 0 : i32
    return %c0_i32, %c0_i32_0 : i32, i32
  }
  func.func @transform_4(%arg0: i32) -> (i32, i32) {
    %c0_i32 = arith.constant 0 : i32
    %c0_i32_0 = arith.constant 0 : i32
    return %c0_i32, %arg0 : i32, i32
  }
  func.func @transform_5(%arg0: i32) -> (i32, i32) {
    %c0_i32 = arith.constant 0 : i32
    %c0_i32_0 = arith.constant 0 : i32
    return %c0_i32, %arg0 : i32, i32
  }
}

</mosaic_0001>

<bundles_post_ra>
// kernel: tpu_custom_call.1
= control target key start
LH: loop header
LB: loop body
LE: loop exit
PB: predicated region body
PF: predicated region fallthrough
CT: control target
= control target key end

     0   :  { %11 = vsyncpa [#allocation3], 0  ;;  %vm72_vm0 = vcmask 1043456   ;;  %v1635_v3 = vmov 0   ;;  %vm65_vm1 = vcmask 195584   ;;  %s1940_s0 = inlined_call_operand.vmem [shape: f32[24,128], index: 0, kind: input, shape index: {}]   ;;  %s1941_s1 = inlined_call_operand.vmem [shape: f32[16,15], index: 1, kind: input, shape index: {}]   ;;  %s1942_s2 = inlined_call_operand.vmem [shape: bf16[384,32], index: 2, kind: input, shape index: {}]   ;;  %s1943_s3 = inlined_call_operand.vmem [shape: f32[384,1], index: 3, kind: input, shape index: {}]   ;;  %s1944_s4 = inlined_call_operand.hbm [shape: f32[1,128], index: 4, kind: output, shape index: {0}]   ;;  %s1945_s5 = inlined_call_operand.hbm [shape: f32[3,128], index: 5, kind: output, shape index: {1}]  }
   0x1   :  { %v24_v0 = vld [vmem:[%s1940_s0 + $0x10] sm:$0xff]  ;;  %v22_v2 = vld [vmem:[%s1940_s0] sm:$0xff]  ;;  %1563 = vset.pattern.permute.xlu0 %v1635_v3  ;;  %v23_v5 = vld [vmem:[%s1940_s0 + $0x8] sm:$0xff]  ;;  %1564 = vset.pattern.permute.xlu1 %v1635_v3 }
   0x2   :  { %v33_v1 = vld [vmem:[%s1943_s3 + $0x10] sm:$0xff]  ;;  %v1680_v4 = vpack.c.bf16 %v24_v0, %v24_v0  ;;  %v1685_v6 = vpack.c.bf16 %v23_v5, %v22_v2  ;;  %v1565_v7 = vld [vmem:[%s1942_s2] sm:$0xff]   ;;  %v34_v9 = vld [vmem:[%s1943_s3 + $0x18] sm:$0xff] }
   0x3   :  { %47 = vperm.xlu0 %1563, %v33_v1   ;;  %1444 = vmatprep.mubr.msk.bf16.mxu0 %vm65_vm1, %v1565_v7  ;;  %v31_v10 = vld [vmem:[%s1943_s3] sm:$0xff]  ;;  %v32_v11 = vld [vmem:[%s1943_s3 + $0x8] sm:$0xff]  ;;  %v137_v13 = vld [vmem:[%s1943_s3 + $0x30] sm:$0xff] }
   0x4   :  { %1555 = vmatprep.subr.msk.bf16.mxu0 %vm72_vm0, %v1680_v4  ;;  %v1694_v8 = vsel %vm72_vm0, %v1680_v4, 0  ;;  %37 = vperm.xlu1 %1564, %v31_v10   ;;  %v1566_v12 = vld [vmem:[%s1942_s2 + $0x8] sm:$0xff]   ;;  %v138_v14 = vld [vmem:[%s1943_s3 + $0x38] sm:$0xff]  ;;  %v135_v15 = vld [vmem:[%s1943_s3 + $0x20] sm:$0xff] }
   0x5   :  { %1441 = vmatpush3.bf16.msra.mxu0 %v1694_v8  ;;  %v136_v16 = vld [vmem:[%s1943_s3 + $0x28] sm:$0xff]  ;;  %v237_v17 = vld [vmem:[%s1943_s3 + $0x50] sm:$0xff]  ;;  %v238_v18 = vld [vmem:[%s1943_s3 + $0x58] sm:$0xff] }
   0x6   :  { %1442 = vmatprep.subr.bf16.mxu0 %v1685_v6  ;;  %v235_v19 = vld [vmem:[%s1943_s3 + $0x40] sm:$0xff]  ;;  %v236_v20 = vld [vmem:[%s1943_s3 + $0x48] sm:$0xff]  ;;  %v336_v21 = vld [vmem:[%s1943_s3 + $0x70] sm:$0xff] }
   0x7   :  { %52 = vperm.xlu0 %1563, %v34_v9   ;;  %v337_v22 = vld [vmem:[%s1943_s3 + $0x78] sm:$0xff]  ;;  %v334_v23 = vld [vmem:[%s1943_s3 + $0x60] sm:$0xff] }
   0x8   :  { %42 = vperm.xlu1 %1564, %v32_v11  }
   0x9   :  { %1443 = vmatpush3.bf16.msra.mxu0 %v1685_v6 }
   0xb   :  { %151 = vperm.xlu0 %1563, %v137_v13  }
   0xc   :  { %1445 = vmatmul.mubr.msk.bf16.vlgmr.msra.gmra.mxu0 %vm65_vm1, %v1566_v12  ;;  %156 = vperm.xlu1 %1564, %v138_v14  }
   0xf   :  { %141 = vperm.xlu0 %1563, %v135_v15  }
  0x10   :  { %146 = vperm.xlu1 %1564, %v136_v16  }
  0x13   :  { %251 = vperm.xlu0 %1563, %v237_v17  }
  0x14   :  { %256 = vperm.xlu1 %1564, %v238_v18  }
  0x17   :  { %241 = vperm.xlu0 %1563, %v235_v19  }
  0x18   :  { %246 = vperm.xlu1 %1564, %v236_v20  }
  0x1b   :  { %350 = vperm.xlu0 %1563, %v336_v21  }
  0x1c   :  { %12 = vsyncpa [#allocation5], 0  ;;  %355 = vperm.xlu1 %1564, %v337_v22   ;;  %v335_v24 = vld [vmem:[%s1943_s3 + $0x68] sm:$0xff]  ;;  %v569_v25 = vld [vmem:[%s1943_s3 + $0x90] sm:$0xff]  ;;  %vm169_vm2 = vcmask 261120   ;;  %vm1637_vm3 = vmmov 0  }
  0x1d   :  { %v570_v26 = vld [vmem:[%s1943_s3 + $0x98] sm:$0xff]  ;;  %v567_v27 = vld [vmem:[%s1943_s3 + $0x80] sm:$0xff]  ;;  %v568_v28 = vld [vmem:[%s1943_s3 + $0x88] sm:$0xff]  ;;  %vm1065_vm4 = vcmask 121856   ;;  %vm1131_vm11 = vcmask 130048   ;;  %vm1257_vm12 = vcmask 64512  }
  0x1e   :  { %v607_v29 = vld [vmem:[%s1943_s3 + $0xd0] sm:$0xff]  ;;  %v608_v30 = vld [vmem:[%s1943_s3 + $0xd8] sm:$0xff]  ;;  %v605_v31 = vld [vmem:[%s1943_s3 + $0xc0] sm:$0xff]  ;;  %s1639_s21 = smov [#allocation2]  }
  0x1f   :  { %340 = vperm.xlu0 %1563, %v334_v23   ;;  %v606_v32 = vld [vmem:[%s1943_s3 + $0xc8] sm:$0xff]  ;;  %v706_v33 = vld [vmem:[%s1943_s3 + $0xf0] sm:$0xff]  ;;  %v707_v34 = vld [vmem:[%s1943_s3 + $0xf8] sm:$0xff]  ;;  %s1317_s22 = sshll.u32 %s1639_s21, 4  ;;  %s1318_s22 = int_to_ptr.vmem [resolvable:$true] %s1317_s22 }
  0x20   :  { %345 = vperm.xlu1 %1564, %v335_v24   ;;  %v704_v35 = vld [vmem:[%s1943_s3 + $0xe0] sm:$0xff]  ;;  %v705_v36 = vld [vmem:[%s1943_s3 + $0xe8] sm:$0xff]  ;;  %v805_v37 = vld [vmem:[%s1943_s3 + $0x110] sm:$0xff]  ;;  %s1591_s23 = scalar_lea.vmem %s1318_s22, 16  ;;  %s1595_s24 = scalar_lea.vmem %s1318_s22, 32 }
  0x21   :  { %v806_v38 = vld [vmem:[%s1943_s3 + $0x118] sm:$0xff]  ;;  %v803_v39 = vld [vmem:[%s1943_s3 + $0x100] sm:$0xff]  ;;  %v804_v40 = vld [vmem:[%s1943_s3 + $0x108] sm:$0xff]  ;;  %p1592_p0 = scmp.ne.s32.totalorder %s1318_s22, %s1591_s23  ;;  %p1596_p1 = scmp.lt.s32.totalorder %s1318_s22, %s1318_s22 }
  0x22   :  { %v965_v41 = vld [vmem:[%s1943_s3 + $0x140] sm:$0xff]  ;;  %v966_v42 = vld [vmem:[%s1943_s3 + $0x148] sm:$0xff]  ;;  %v963_v43 = vld [vmem:[%s1943_s3 + $0x130] sm:$0xff]  ;;  %p1597_p2 = scmp.lt.s32.totalorder %s1595_s24, %s1591_s23 }
  0x23   :  { %583 = vperm.xlu0 %1563, %v569_v25   ;;  %v964_v44 = vld [vmem:[%s1943_s3 + $0x138] sm:$0xff]  ;;  %v1059_v45 = vld [vmem:[%s1943_s3 + $0x150] sm:$0xff]  ;;  %v899_v46 = vld [vmem:[%s1943_s3 + $0x120] sm:$0x1] }
  0x24   :  { %588 = vperm.xlu1 %1564, %v570_v26   ;;  %v1251_v47 = vld [vmem:[%s1943_s3 + $0x170] sm:$0x7]  ;;  %v1568_v3 = vld [vmem:[%s1942_s2 + $0x18] sm:$0xff]   ;;  %v1569_v5 = vld [vmem:[%s1942_s2 + $0x20] sm:$0xff]   ;;  %p1598_p3 = por %p1597_p2, %p1596_p1 }
  0x25   :  { %v1567_v48 = vld [vmem:[%s1942_s2 + $0x10] sm:$0xff]   ;;  %1460 = vmatprep.mubr.msk.bf16.mxu0 %vm169_vm2, %v1569_v5  ;;  %v1570_v26 = vld [vmem:[%s1942_s2 + $0x28] sm:$0xff]  }
  0x26   :  { %1452 = vmatprep.mubr.msk.bf16.mxu1 %vm169_vm2, %v1567_v48  ;;  %p1599_p4 = pnand %p1598_p3, %p1592_p0 }
  0x27   :  { %573 = vperm.xlu0 %1563, %v567_v27   ;;  %v1571_v27 = vld [vmem:[%s1942_s2 + $0x30] sm:$0xff]  }
  0x28   :  { %578 = vperm.xlu1 %1564, %v568_v28  }
  0x2b   :  { %621 = vperm.xlu0 %1563, %v607_v29  }
  0x2c   :  { %626 = vperm.xlu1 %1564, %v608_v30  }
  0x2f   :  { %611 = vperm.xlu0 %1563, %v605_v31  }
  0x30   :  { %616 = vperm.xlu1 %1564, %v606_v32  }
  0x33   :  { %720 = vperm.xlu0 %1563, %v706_v33  }
  0x34   :  { %725 = vperm.xlu1 %1564, %v707_v34  }
  0x37   :  { %710 = vperm.xlu0 %1563, %v704_v35  }
  0x38   :  { %715 = vperm.xlu1 %1564, %v705_v36  }
  0x3b   :  { %819 = vperm.xlu0 %1563, %v805_v37  }
  0x3c   :  { %824 = vperm.xlu1 %1564, %v806_v38  }
  0x3f   :  { %809 = vperm.xlu0 %1563, %v803_v39  }
  0x40   :  { %814 = vperm.xlu1 %1564, %v804_v40  }
  0x43   :  { %979 = vperm.xlu0 %1563, %v965_v41  }
  0x44   :  { %984 = vperm.xlu1 %1564, %v966_v42  }
  0x47   :  { %969 = vperm.xlu0 %1563, %v963_v43   ;;  %v1572_v43 = vld [vmem:[%s1942_s2 + $0x38] sm:$0xff]  }
  0x48   :  { %974 = vperm.xlu1 %1564, %v964_v44   ;;  %v1573_v44 = vld [vmem:[%s1942_s2 + $0x50] sm:$0xff]  }
  0x4b   :  { %1062 = vperm.xlu0 %1563, %v1059_v45   ;;  %v1574_v45 = vld [vmem:[%s1942_s2 + $0x58] sm:$0xff]  }
  0x4c   :  { %902 = vperm.xlu1 %1564, %v899_v46   ;;  %v1575_v46 = vld [vmem:[%s1942_s2 + $0x40] sm:$0xff]  }
  0x4f   :  { %1254 = vperm.xlu0 %1563, %v1251_v47  }
  0x7e   :  { %v48_v49 = vpop.permute.xlu0 %47 }
  0x7f   :  { %v38_v50 = vpop.permute.xlu1 %37 }
  0x82   :  { %v53_v54 = vpop.permute.xlu0 %52 }
  0x83   :  { %v43_v58 = vpop.permute.xlu1 %42 }
  0x86   :  { %v152_v7 = vpop.permute.xlu0 %151 }
  0x87   :  { %v157_v9 = vpop.permute.xlu1 %156 }
  0x8a   :  { %v142_v13 = vpop.permute.xlu0 %141 }
  0x8b   :  { %v147_v17 = vpop.permute.xlu1 %146 }
  0x8e   :  { %v252_v28 = vpop.permute.xlu0 %251 }
  0x8f   :  { %v257_v29 = vpop.permute.xlu1 %256 }
  0xcc   :  { %v1446_v51 = vpop.f32.mrf.mxu0 }
  0xcd   :  { %v119_v53 = vadd.f32 %v1446_v51, %v48_v49 }
  0xce   :  { %v110_v52 = vpop.f32.mrf.mxu0 }
  0xcf   :  { %v111_v56 = vadd.f32 %v110_v52, %v38_v50  ;;  %v127_v60 = vmax.f32 %v119_v53, 0.0 }
  0xd0   :  { %v1447_v55 = vpop.f32.mrf.mxu0 }
  0xd1   :  { %v122_v57 = vadd.f32 %v1447_v55, %v53_v54  ;;  %v125_v63 = vmax.f32 %v111_v56, 0.0 }
  0xd2   :  { %v113_v59 = vpop.f32.mrf.mxu0 }
  0xd3   :  { %v128_v61 = vmax.f32 %v122_v57, 0.0  ;;  %v114_v62 = vadd.f32 %v113_v59, %v43_v58 }
  0xd5   :  { %v126_v0 = vmax.f32 %v114_v62, 0.0  ;;  %v130_v1 = vpack.c.bf16 %v128_v61, %v127_v60 }
  0xd7   :  { %v129_v2 = vpack.c.bf16 %v126_v0, %v125_v63  ;;  %1448 = vmatprep.subr.bf16.mxu1 %v130_v1 }
  0xd8   :  { %1449 = vmatpush3.bf16.msra.mxu1 %v130_v1  ;;  %v1576_v1 = vld [vmem:[%s1942_s2 + $0x48] sm:$0xff]  }
  0xd9   :  { %1450 = vmatprep.subr.bf16.mxu1 %v129_v2 }
  0xdc   :  { %1451 = vmatpush3.bf16.msra.mxu1 %v129_v2  ;;  %v1577_v2 = vld [vmem:[%s1942_s2 + $0x60] sm:$0xff]  }
  0xdf   :  { %1453 = vmatmul.mubr.msk.bf16.vlgmr.msra.gmra.mxu1 %vm169_vm2, %v1568_v3 }
  0xe0   :  { %1468 = vmatprep.mubr.msk.bf16.mxu1 %vm169_vm2, %v1571_v27 }
 0x19f   :  { %v1454_v10 = vpop.f32.mrf.mxu1 }
 0x1a0   :  { %v219_v12 = vadd.f32 %v1454_v10, %v152_v7 }
 0x1a1   :  { %v210_v11 = vpop.f32.mrf.mxu1 }
 0x1a2   :  { %v211_v15 = vadd.f32 %v210_v11, %v142_v13  ;;  %v227_v19 = vmax.f32 %v219_v12, 0.0 }
 0x1a3   :  { %v1455_v14 = vpop.f32.mrf.mxu1 }
 0x1a4   :  { %v222_v16 = vadd.f32 %v1455_v14, %v157_v9  ;;  %v225_v22 = vmax.f32 %v211_v15, 0.0 }
 0x1a5   :  { %v213_v18 = vpop.f32.mrf.mxu1 }
 0x1a6   :  { %v228_v20 = vmax.f32 %v222_v16, 0.0  ;;  %v214_v21 = vadd.f32 %v213_v18, %v147_v17 }
 0x1a8   :  { %v230_v23 = vpack.c.bf16 %v228_v20, %v227_v19  ;;  %v226_v24 = vmax.f32 %v214_v21, 0.0 }
 0x1aa   :  { %v229_v25 = vpack.c.bf16 %v226_v24, %v225_v22  ;;  %1456 = vmatprep.subr.bf16.mxu0 %v230_v23 }
 0x1ab   :  { %1457 = vmatpush3.bf16.msra.mxu0 %v230_v23 }
 0x1ac   :  { %1458 = vmatprep.subr.bf16.mxu0 %v229_v25 }
 0x1af   :  { %1459 = vmatpush3.bf16.msra.mxu0 %v229_v25 }
 0x1b0   :  { %1556 = vmatprep.subr.msk.bf16.mxu0 %vm72_vm0, %v1680_v4  ;;  %v242_v4 = vpop.permute.xlu0 %241 }
 0x1b2   :  { %1461 = vmatmul.mubr.msk.bf16.vlgmr.msra.gmra.mxu0 %vm169_vm2, %v1570_v26 }
 0x1b3   :  { %1473 = vmatpush3.bf16.msra.mxu0 %v1694_v8  ;;  %v247_v8 = vpop.permute.xlu1 %246  ;;  %1476 = vmatprep.mubr.msk.bf16.mxu0 %vm65_vm1, %v1573_v44 }
 0x1b4   :  { %1474 = vmatprep.subr.bf16.mxu0 %v1685_v6  ;;  %v351_v47 = vpop.permute.xlu0 %350 }
 0x1b7   :  { %1475 = vmatpush3.bf16.msra.mxu0 %v1685_v6  ;;  %v356_v48 = vpop.permute.xlu1 %355 }
 0x1b8   :  { %v341_v52 = vpop.permute.xlu0 %340 }
 0x1ba   :  { %1477 = vmatmul.mubr.msk.bf16.vlgmr.msra.gmra.mxu0 %vm65_vm1, %v1574_v45 }
 0x1bb   :  { %v346_v56 = vpop.permute.xlu1 %345  ;;  %1492 = vmatprep.mubr.msk.bf16.mxu0 %vm169_vm2, %v1577_v2 }
 0x1bc   :  { %v584_v7 = vpop.permute.xlu0 %583 }
 0x1bf   :  { %v589_v10 = vpop.permute.xlu1 %588 }
 0x1c0   :  { %v574_v16 = vpop.permute.xlu0 %573 }
 0x1c3   :  { %v579_v24 = vpop.permute.xlu1 %578 }
 0x272   :  { %v1462_v30 = vpop.f32.mrf.mxu0 }
 0x273   :  { %v318_v32 = vadd.f32 %v1462_v30, %v252_v28 }
 0x274   :  { %v309_v31 = vpop.f32.mrf.mxu0 }
 0x275   :  { %v310_v34 = vadd.f32 %v309_v31, %v242_v4  ;;  %v326_v37 = vmax.f32 %v318_v32, 0.0  ;;  %v1578_v32 = vld [vmem:[%s1942_s2 + $0x68] sm:$0xff]   ;;  %v1579_v4 = vld [vmem:[%s1942_s2 + $0x70] sm:$0xff]  }
 0x276   :  { %v1463_v33 = vpop.f32.mrf.mxu0 }
 0x277   :  { %v321_v35 = vadd.f32 %v1463_v33, %v257_v29  ;;  %v324_v39 = vmax.f32 %v310_v34, 0.0  ;;  %v622_v33 = vpop.permute.xlu0 %621  ;;  %v627_v34 = vpop.permute.xlu1 %626 }
 0x278   :  { %v312_v36 = vpop.f32.mrf.mxu0 }
 0x279   :  { %v327_v38 = vmax.f32 %v321_v35, 0.0  ;;  %v313_v6 = vadd.f32 %v312_v36, %v247_v8 }
 0x27a   :  { %v1478_v3 = vpop.f32.mrf.mxu0 }
 0x27b   :  { %v329_v40 = vpack.c.bf16 %v327_v38, %v326_v37  ;;  %v325_v41 = vmax.f32 %v313_v6, 0.0  ;;  %v612_v37 = vpop.permute.xlu0 %611 }
 0x27c   :  { %v487_v5 = vpop.f32.mrf.mxu0 }
 0x27d   :  { %v328_v42 = vpack.c.bf16 %v325_v41, %v324_v39  ;;  %1464 = vmatprep.subr.bf16.mxu1 %v329_v40 }
 0x27e   :  { %1465 = vmatpush3.bf16.msra.mxu1 %v329_v40  ;;  %v1479_v12 = vpop.f32.mrf.mxu0  ;;  %v617_v40 = vpop.permute.xlu1 %616 }
 0x27f   :  { %1466 = vmatprep.subr.bf16.mxu1 %v328_v42 }
 0x280   :  { %v490_v19 = vpop.f32.mrf.mxu0 }
 0x282   :  { %1467 = vmatpush3.bf16.msra.mxu1 %v328_v42 }
 0x285   :  { %1469 = vmatmul.mubr.msk.bf16.vlgmr.msra.gmra.mxu1 %vm169_vm2, %v1572_v43 }
 0x286   :  { %1484 = vmatprep.mubr.msk.bf16.mxu1 %vm169_vm2, %v1575_v46 }
 0x345   :  { %v1470_v49 = vpop.f32.mrf.mxu1 }
 0x346   :  { %v417_v51 = vadd.f32 %v1470_v49, %v351_v47  ;;  %v1580_v49 = vld [vmem:[%s1942_s2 + $0x78] sm:$0xff]  }
 0x347   :  { %v408_v50 = vpop.f32.mrf.mxu1 }
 0x348   :  { %v409_v54 = vadd.f32 %v408_v50, %v341_v52  ;;  %v425_v58 = vmax.f32 %v417_v51, 0.0  ;;  %v1581_v50 = vld [vmem:[%s1942_s2 + $0x80] sm:$0xff]   ;;  %v721_v51 = vpop.permute.xlu0 %720  ;;  %v726_v52 = vpop.permute.xlu1 %725 }
 0x349   :  { %v1471_v53 = vpop.f32.mrf.mxu1 }
 0x34a   :  { %v420_v55 = vadd.f32 %v1471_v53, %v356_v48  ;;  %v423_v61 = vmax.f32 %v409_v54, 0.0 }
 0x34b   :  { %v411_v57 = vpop.f32.mrf.mxu1 }
 0x34c   :  { %v426_v59 = vmax.f32 %v420_v55, 0.0  ;;  %v412_v60 = vadd.f32 %v411_v57, %v346_v56  ;;  %v711_v56 = vpop.permute.xlu0 %710 }
 0x34e   :  { %v428_v62 = vpack.c.bf16 %v426_v59, %v425_v58  ;;  %v424_v63 = vmax.f32 %v412_v60, 0.0  ;;  %v716_v60 = vpop.permute.xlu1 %715 }
 0x350   :  { %v427_v0 = vpack.c.bf16 %v424_v63, %v423_v61  ;;  %1480 = vmatprep.subr.bf16.mxu1 %v428_v62 }
 0x351   :  { %1481 = vmatpush3.bf16.msra.mxu1 %v428_v62 }
 0x352   :  { %1482 = vmatprep.subr.bf16.mxu1 %v427_v0 }
 0x355   :  { %1483 = vmatpush3.bf16.msra.mxu1 %v427_v0 }
 0x358   :  { %1485 = vmatmul.mubr.msk.bf16.vlgmr.msra.gmra.mxu1 %vm169_vm2, %v1576_v1 }
 0x359   :  { %1500 = vmatprep.mubr.msk.bf16.mxu1 %vm169_vm2, %v1579_v4  ;;  %v1584_v4 = vld [vmem:[%s1942_s2 + $0xa0] sm:$0xff]  }
 0x418   :  { %v1486_v9 = vpop.f32.mrf.mxu1 }
 0x419   :  { %v561_v11 = vadd.f32 %v1486_v9, %v1478_v3  ;;  %v1636_v9 = vmov 0.0  }
 0x41a   :  { %v552_v13 = vpop.f32.mrf.mxu1 }
 0x41b   :  { %v553_v14 = vadd.f32 %v552_v13, %v487_v5  ;;  %v593_v17 = vadd.f32 %v584_v7, %v561_v11  ;;  %v1582_v7 = vld [vmem:[%s1942_s2 + $0x88] sm:$0xff]   ;;  %v820_v11 = vpop.permute.xlu0 %819 }
 0x41c   :  { %v1487_v15 = vpop.f32.mrf.mxu1 }
 0x41d   :  { %v564_v18 = vadd.f32 %v1487_v15, %v1479_v12  ;;  %v591_v21 = vadd.f32 %v574_v16, %v553_v14  ;;  %v597_v25 = vmax.f32 %v593_v17, 0.0  ;;  %v825_v12 = vpop.permute.xlu1 %824 }
 0x41e   :  { %v555_v20 = vpop.f32.mrf.mxu1 }
 0x41f   :  { %v594_v22 = vadd.f32 %v589_v10, %v564_v18  ;;  %v556_v23 = vadd.f32 %v555_v20, %v490_v19  ;;  %v595_v28 = vmax.f32 %v591_v21, 0.0  ;;  %v1583_v10 = vld [vmem:[%s1942_s2 + $0x98] sm:$0xff]   ;;  %v810_v16 = vpop.permute.xlu0 %809 }
 0x421   :  { %v598_v26 = vmax.f32 %v594_v22, 0.0  ;;  %v592_v27 = vadd.f32 %v579_v24, %v556_v23  ;;  %v815_v20 = vpop.permute.xlu1 %814 }
 0x423   :  { %v596_v29 = vmax.f32 %v592_v27, 0.0  ;;  %v600_v30 = vpack.c.bf16 %v598_v26, %v597_v25 }
 0x425   :  { %1488 = vmatprep.subr.bf16.mxu0 %v600_v30  ;;  %v599_v31 = vpack.c.bf16 %v596_v29, %v595_v28  ;;  %v1056_v28 = vld [vmem:[%s1941_s1] sm:$0xff]  ;;  %v1057_v29 = vld [vmem:[%s1941_s1 + $0x8] sm:$0xff] }
 0x426   :  { %1489 = vmatpush3.bf16.msra.mxu0 %v600_v30 }
 0x427   :  { %1490 = vmatprep.subr.bf16.mxu0 %v599_v31 }
 0x42a   :  { %1491 = vmatpush3.bf16.msra.mxu0 %v599_v31  ;;  %v1058_v31 = vpack.c.bf16 %v1057_v29, %v1056_v28 }
 0x42d   :  { %1493 = vmatmul.mubr.msk.bf16.vlgmr.msra.gmra.mxu0 %vm169_vm2, %v1578_v32  ;;  %v898_v32 = vld [vmem:[%s1942_s2 + $0x90] sm:$0x1] }
 0x42e   :  { %1508 = vmatprep.mubr.msk.bf16.mxu0 %vm169_vm2, %v1581_v50 }
 0x4ed   :  { %v1494_v35 = vpop.f32.mrf.mxu0 }
 0x4ee   :  { %v688_v36 = vadd.f32 %v1494_v35, %v622_v33  ;;  %v1070_v33 = vsel %vm1065_vm4, %v1058_v31, 0  ;;  %v1112_v35 = vlaneseq }
 0x4ef   :  { %v679_v8 = vpop.f32.mrf.mxu0 }
 0x4f0   :  { %v680_v6 = vadd.f32 %v679_v8, %v612_v37  ;;  %v696_v42 = vmax.f32 %v688_v36, 0.0  ;;  %v1113_v8 = vshrl.u32 %v1112_v35, 7 }
 0x4f1   :  { %v1495_v38 = vpop.f32.mrf.mxu0 }
 0x4f2   :  { %v691_v39 = vadd.f32 %v1495_v38, %v627_v34  ;;  %v694_v45 = vmax.f32 %v680_v6, 0.0  ;;  %v1055_v34 = vld [vmem:[%s1942_s2 + $0xb0] sm:$0xf]  ;;  %v1114_v36 = vadd.s32 8, %v1113_v8  ;;  %v1116_v38 = vand.u32 127, %v1112_v35 }
 0x4f3   :  { %v682_v41 = vpop.f32.mrf.mxu0 }
 0x4f4   :  { %v697_v43 = vmax.f32 %v691_v39, 0.0  ;;  %v683_v44 = vadd.f32 %v682_v41, %v617_v40  ;;  %v1122_v37 = vadd.s32 1, %v1114_v36  ;;  %v1118_v6 = vmul.u32 8, %v1114_v36 }
 0x4f5   :  { %v1121_v40 = vadd.s32 1, %v1113_v8  ;;  %v1117_v41 = vmul.u32 8, %v1113_v8 }
 0x4f6   :  { %v699_v46 = vpack.c.bf16 %v697_v43, %v696_v42  ;;  %v695_v47 = vmax.f32 %v683_v44, 0.0  ;;  %v1124_v39 = vmul.u32 8, %v1122_v37  ;;  %vm1120_vm5 = vcmp.ge.s32.totalorder %v1116_v38, %v1118_v6  ;;  %v985_v44 = vpop.permute.xlu1 %984 }
 0x4f7   :  { %v1123_v42 = vmul.u32 8, %v1121_v40  ;;  %v1638_v43 = vmov 1.0   ;;  %vm1119_vm8 = vcmp.ge.s32.totalorder %v1116_v38, %v1117_v41 }
 0x4f8   :  { %v698_v48 = vpack.c.bf16 %v695_v47, %v694_v45  ;;  %1496 = vmatprep.subr.bf16.mxu1 %v699_v46  ;;  %vm1126_vm6 = vcmp.lt.s32.totalorder %v1116_v38, %v1124_v39 }
 0x4f9   :  { %1497 = vmatpush3.bf16.msra.mxu1 %v699_v46  ;;  %vm1128_vm7 = vmand %vm1120_vm5, %vm1126_vm6  ;;  %vm1125_vm9 = vcmp.lt.s32.totalorder %v1116_v38, %v1123_v42  ;;  %v980_v46 = vpop.permute.xlu0 %979 }
 0x4fa   :  { %1498 = vmatprep.subr.bf16.mxu1 %v698_v48  ;;  %vm1127_vm10 = vmand %vm1119_vm8, %vm1125_vm9  ;;  %v975_v45 = vpop.permute.xlu1 %974 }
 0x4fd   :  { %1499 = vmatpush3.bf16.msra.mxu1 %v698_v48 }
 0x4fe   :  { %1512 = vmatprep.subr.bf16.mxu1 %v1636_v9  ;;  %v903_v47 = vpop.permute.xlu1 %902 }
 0x500   :  { %1501 = vmatmul.mubr.msk.bf16.vlgmr.msra.gmra.mxu1 %vm169_vm2, %v1580_v49 }
 0x501   :  { %1516 = vmatprep.mubr.msk.bf16.mxu1 %vm1637_vm3, %v1636_v9 }
 0x5c0   :  { %v1502_v53 = vpop.f32.mrf.mxu1 }
 0x5c1   :  { %v787_v55 = vadd.f32 %v1502_v53, %v721_v51  ;;  %v970_v51 = vpop.permute.xlu0 %969 }
 0x5c2   :  { %v778_v54 = vpop.f32.mrf.mxu1 }
 0x5c3   :  { %v779_v58 = vadd.f32 %v778_v54, %v711_v56  ;;  %v795_v62 = vmax.f32 %v787_v55, 0.0 }
 0x5c4   :  { %v1503_v57 = vpop.f32.mrf.mxu1 }
 0x5c5   :  { %v790_v59 = vadd.f32 %v1503_v57, %v726_v52  ;;  %v793_v1 = vmax.f32 %v779_v58, 0.0 }
 0x5c6   :  { %v781_v61 = vpop.f32.mrf.mxu1 }
 0x5c7   :  { %v796_v63 = vmax.f32 %v790_v59, 0.0  ;;  %v782_v0 = vadd.f32 %v781_v61, %v716_v60 }
 0x5c9   :  { %v798_v2 = vpack.c.bf16 %v796_v63, %v795_v62  ;;  %v794_v3 = vmax.f32 %v782_v0, 0.0  ;;  %v1063_v63 = vpop.permute.xlu0 %1062 }
 0x5cb   :  { %v797_v5 = vpack.c.bf16 %v794_v3, %v793_v1  ;;  %1504 = vmatprep.subr.bf16.mxu0 %v798_v2 }
 0x5cc   :  { %1505 = vmatpush3.bf16.msra.mxu0 %v798_v2 }
 0x5cd   :  { %1506 = vmatprep.subr.bf16.mxu0 %v797_v5 }
 0x5d0   :  { %1507 = vmatpush3.bf16.msra.mxu0 %v797_v5 }
 0x5d3   :  { %1509 = vmatmul.mubr.msk.bf16.vlgmr.msra.gmra.mxu0 %vm169_vm2, %v1582_v7 }
 0x5d4   :  { %1524 = vmatprep.mubr.msk.bf16.mxu0 %vm169_vm2, %v1583_v10 }
 0x693   :  { %v1510_v13 = vpop.f32.mrf.mxu0 }
 0x694   :  { %v886_v15 = vadd.f32 %v1510_v13, %v820_v11 }
 0x695   :  { %v877_v14 = vpop.f32.mrf.mxu0 }
 0x696   :  { %v878_v18 = vadd.f32 %v877_v14, %v810_v16  ;;  %v894_v22 = vmax.f32 %v886_v15, 0.0  ;;  %v1054_v14 = vld [vmem:[%s1942_s2 + $0xa8] sm:$0xf] }
 0x697   :  { %v1511_v17 = vpop.f32.mrf.mxu0 }
 0x698   :  { %v889_v19 = vadd.f32 %v1511_v17, %v825_v12  ;;  %v892_v25 = vmax.f32 %v878_v18, 0.0 }
 0x699   :  { %v880_v21 = vpop.f32.mrf.mxu0 }
 0x69a   :  { %v895_v23 = vmax.f32 %v889_v19, 0.0  ;;  %v881_v24 = vadd.f32 %v880_v21, %v815_v20 }
 0x69c   :  { %v897_v26 = vpack.c.bf16 %v895_v23, %v894_v22  ;;  %v893_v27 = vmax.f32 %v881_v24, 0.0 }
 0x69e   :  { %v896_v30 = vpack.c.bf16 %v893_v27, %v892_v25  ;;  %1513 = vmatpush3.bf16.msra.mxu1 %v897_v26  ;;  %1520 = vmatprep.subr.bf16.mxu0 %v897_v26 }
 0x69f   :  { %1521 = vmatpush3.bf16.msra.mxu0 %v897_v26  ;;  %1514 = vmatprep.subr.bf16.mxu1 %v1636_v9 }
 0x6a0   :  { %1522 = vmatprep.subr.bf16.mxu0 %v896_v30 }
 0x6a2   :  { %1515 = vmatpush3.bf16.msra.mxu1 %v896_v30 }
 0x6a3   :  { %1523 = vmatpush3.bf16.msra.mxu0 %v896_v30  ;;  %1528 = vmatprep.subr.bf16.mxu1 %v1636_v9  ;;  %v1250_v30 = vld [vmem:[%s1942_s2 + $0xb8] sm:$0x3] }
 0x6a4   :  { %1534 = vmatprep.subr.mxu0 %v1636_v9 }
 0x6a5   :  { %1517 = vmatmul.mubr.msk.bf16.vlgmr.msra.gmra.mxu1 %vm169_vm2, %v898_v32 }
 0x6a6   :  { %1525 = vmatmul.mubr.msk.bf16.vlgmr.msra.gmra.mxu0 %vm169_vm2, %v1584_v4  ;;  %1529 = vmatpush3.bf16.xpose.msra.mxu1 %v1070_v33 }
 0x6a7   :  { %1530 = vmatprep.mubr.msk.bf16.mxu1 %vm1637_vm3, %v1636_v9  ;;  %1541 = vmatprep.subr.bf16.mxu1 %v1636_v9 }
 0x6a8   :  { %1538 = vmatprep.mubr.msk.f32.mxu0 %vm1637_vm3, %v1636_v9  ;;  %1535 = vmatpush3.msk.msra.mxu0 %vm1128_vm7, %v1638_v43 }
 0x6a9   :  { %1536 = vmatprep.subr.mxu0 %v1636_v9 }
 0x6aa   :  { %1537 = vmatpush3.msk.msra.mxu0 %vm1127_vm10, %v1638_v43 }
 0x6ab   :  { %1549 = vmatprep.subr.bf16.mxu0 %v1636_v9 }
 0x6ad   :  { %1531 = vmatmul.mubr.msk.bf16.vlgmr.msra.gmra.mxu1 %vm1065_vm4, %v1055_v34 }
 0x6ae   :  { %1545 = vmatprep.mubr.msk.bf16.mxu1 %vm1637_vm3, %v1636_v9 }
 0x765   :  { %v942_v48 = vpop.f32.mrf.mxu1 }
 0x766   :  { %v943_v49 = vadd.f32 %v942_v48, %v903_v47  ;;  %v1526_v50 = vpop.f32.mrf.mxu0 }
 0x767   :  { %v1518_v52 = vpop.f32.mrf.mxu1  ;;  %v1046_v58 = vadd.f32 %v1526_v50, %v980_v46 }
 0x768   :  { %v948_v53 = vadd.f32 -1.0, %v943_v49  ;;  %v1037_v54 = vpop.f32.mrf.mxu0 }
 0x769   :  { %v945_v55 = vpop.f32.mrf.mxu1  ;;  %v1038_v7 = vadd.f32 %v1037_v54, %v970_v51 }
 0x76a   :  { %v950_v56 = vand.u32 2147483647, %v948_v53  ;;  %v1527_v57 = vpop.f32.mrf.mxu0  ;;  %v949_v18 = vmax.f32 %v948_v53, 0.0 }
 0x76b   :  { %v1049_v59 = vadd.f32 %v1527_v57, %v985_v44  ;;  %v1519_v60 = vpop.f32.mrf.mxu1 }
 0x76c   :  { %v951_v61 = vsub.f32 0.0, %v950_v56  ;;  %v1040_v62 = vpop.f32.mrf.mxu0 }
 0x76d   :  { %v1053_v0 = vpack.c.bf16 %v1049_v59, %v1046_v58  ;;  %v1041_v1 = vadd.f32 %v1040_v62, %v975_v45  ;;  %v1106_v2 = vpop.f32.mrf.mxu1 }
 0x76e   :  { %v952_v3 = vmul.f32 1.442695, %v951_v61  ;;  %v1107_v5 = vadd.f32 %v1106_v2, %v1063_v63 }
 0x76f   :  { %v1532_v10 = vpop.f32.mrf.mxu1  ;;  %1542 = vmatpush3.bf16.msra.mxu1 %v1053_v0  ;;  %v1052_v11 = vpack.c.bf16 %v1041_v1, %v1038_v7 }
 0x770   :  { %1585 = vpow2.f32 %v952_v3  ;;  %1539 = vmatmul.mubr.msk.f32.vlgmr.msra.gmra.mxu0 %vm1131_vm11, %v1107_v5  ;;  %1543 = vmatprep.subr.bf16.mxu1 %v1636_v9 }
 0x771   :  { %v1109_v12 = vpop.f32.mrf.mxu1  ;;  %1551 = vmatprep.mubr.msk.bf16.mxu0 %vm1637_vm3, %v1636_v9 }
 0x773   :  { %v1533_v13 = vpop.f32.mrf.mxu1  ;;  %1544 = vmatpush3.bf16.msra.mxu1 %v1052_v11 }
 0x776   :  { %1546 = vmatmul.mubr.msk.bf16.vlgmr.msra.gmra.mxu1 %vm169_vm2, %v1054_v14 }
 0x77d   :  { %v1586_v15 = vpop.eup %1585 }
 0x77e   :  { %v954_v16 = vadd.f32 1.0, %v1586_v15 }
 0x780   :  { %1587 = vlog2.f32 %v954_v16 }
 0x78d   :  { %v1588_v17 = vpop.eup %1587 }
 0x78e   :  { %v956_v19 = vmul.f32 0.6931472, %v1588_v17 }
 0x790   :  { %v957_v20 = vadd.f32 %v956_v19, %v949_v18 }
 0x792   :  { %958 = vst [vmem:[#allocation2] sm:$0x1] %v957_v20 }
 0x830   :  { %v1201_v21 = vpop.f32.mrf.mxu0 }
 0x832   :  { %v1540_v22 = vpop.f32.mrf.mxu0 }
 0x836   :  { %v1242_v23 = vpop.f32.mrf.mxu1 }
 0x837   :  { %v1243_v9 = vadd.f32 %v1242_v23, %v1201_v21 }
 0x838   :  { %v1547_v24 = vpop.f32.mrf.mxu1 }
 0x839   :  { %v1248_v25 = vmax.f32 %v1243_v9, 0.0 }
 0x83a   :  { %v1245_v26 = vpop.f32.mrf.mxu1 }
 0x83b   :  { %v1249_v27 = vpack.c.bf16 %v1248_v25, %v1248_v25 }
 0x83c   :  { %v1548_v28 = vpop.f32.mrf.mxu1 }
 0x83d   :  { %v1262_v29 = vsel %vm72_vm0, %v1249_v27, 0 }
 0x83e   :  { %1550 = vmatpush3.bf16.msra.mxu0 %v1262_v29 }
 0x841   :  { %1552 = vmatmul.mubr.msk.bf16.vlgmr.msra.gmra.mxu0 %vm1257_vm12, %v1250_v30 }
 0x842   :  { %1602 = shalt.err (!%p1599_p4)
}
 0x843   :  { %1320 = dma.vmem_to_hbm [thread:$0]  %s1318_s22, 16, %s1944_s4, [#allocation3]   ;;  %v1255_v31 = vpop.permute.xlu0 %1254 }
 0x844   :  { %s1640_s2 = smov [#allocation4]  }
 0x845   :  { %s1327_s27 = sshll.u32 %s1640_s2, 4  ;;  %s1328_s27 = int_to_ptr.vmem [resolvable:$true] %s1327_s27 }
 0x846   :  { %s1611_s28 = scalar_lea.vmem %s1328_s27, 64  ;;  %p1616_p6 = scmp.lt.s32.totalorder %s1328_s27, %s1328_s27 }
 0x847   :  { %p1612_p5 = scmp.ne.s32.totalorder %s1328_s27, %s1611_s28  ;;  %p1617_p7 = scmp.lt.s32.totalorder %s1611_s28, %s1611_s28 }
 0x849   :  { %p1618_p8 = por %p1617_p7, %p1616_p6 }
 0x84b   :  { %p1619_p9 = pnand %p1618_p8, %p1612_p5 }
 0x901   :  { %v1298_v32 = vpop.f32.mrf.mxu0 }
 0x902   :  { %v1299_v4 = vadd.f32 %v1298_v32, %v1255_v31 }
 0x903   :  { %v1553_v33 = vpop.f32.mrf.mxu0 }
 0x904   :  { %v1304_v34 = vmul.f32 0.5, %v1299_v4 }
 0x905   :  { %v1301_v35 = vpop.f32.mrf.mxu0 }
 0x906   :  { %1589 = vtanh.f32 %v1304_v34 }
 0x907   :  { %v1554_v8 = vpop.f32.mrf.mxu0 }
 0x913   :  { %v1590_v36 = vpop.eup %1589 }
 0x914   :  { %v1306_v37 = vadd.f32 1.0, %v1590_v36 }
 0x916   :  { %v1307_v38 = vmul.f32 0.5, %v1306_v37 }
 0x918   :  { %v1308_v6 = vmul.f32 1.002, %v1307_v38 }
 0x91a   :  { %v1386_v39 = vadd.f32 -0.001, %v1308_v6 }
 0x91c   :  { %1310 = vst [vmem:[#allocation4] sm:$0x7] %v1386_v39 }
 0x91d   :  { %1622 = shalt.err (!%p1619_p9)
}
 0x91e   :  { %1330 = dma.vmem_to_hbm [thread:$0]  %s1328_s27, 64, %s1945_s5, [#allocation5]  }
 0x91f   :  { %1631 = dma.done.wait [#allocation3], 16  }
 0x920   :  { %1632 = vsyncadd [#allocation3], 4294967280 }
 0x921   :  { %1633 = dma.done.wait [#allocation5], 64  }
 0x922   :  { %1634 = vsyncadd [#allocation5], 4294967232 }
 0x923   :  { %1337 = vsyncpa [#allocation3], 1 }
 0x924   :  { %1338 = vsyncpa [#allocation5], 1 }

</bundles_post_ra>
